<compile_context>
chip_gen: v7x
topology: tpu7x:2x2x1
jax: 0.10.0
libtpu: 0.0.40
codegen_flags: <defaults>
</compile_context>

<pallas_src>
import functools

import jax
import jax.numpy as jnp
from jax import lax
from jax.experimental import pallas as pl
from jax.experimental.pallas import tpu as pltpu

# Contract last dim of LHS with last dim of RHS -> (tm, tn); no batch dims.
_DN = (((1,), (1,)), ((), ()))


def _cca_kernel(x_ref, y_ref, wx_ref, wy_ref, out_ref):
    # x: (tm, x_dim), y: (tm, y_dim), wx: (tn, x_dim), wy: (tn, y_dim)
    acc = lax.dot_general(x_ref[...], wx_ref[...], _DN,
                          preferred_element_type=jnp.float32)
    acc = acc + lax.dot_general(y_ref[...], wy_ref[...], _DN,
                                preferred_element_type=jnp.float32)
    out_ref[...] = acc.astype(out_ref.dtype)


def _sfa_kernel(x_ref, y_ref, w_ref, out_ref):
    eta = x_ref[...] + y_ref[...]          # fused in-kernel (no HBM eta)
    out_ref[...] = lax.dot_general(eta, w_ref[...], _DN,
                                   preferred_element_type=jnp.float32
                                   ).astype(out_ref.dtype)


def _cpca_kernel(x_ref, w_ref, out_ref, *, delta):
    eta = x_ref[...] * delta               # fused in-kernel (no HBM eta)
    out_ref[...] = lax.dot_general(eta, w_ref[...], _DN,
                                   preferred_element_type=jnp.float32
                                   ).astype(out_ref.dtype)


def _round_up(n, m):
    return ((n + m - 1) // m) * m


def _tile(dim, block, align):
    """Pick (tile, padded_dim) for one grid axis.

    If the dim fits in a single block, use the full dim as the tile (legal for
    BlockSpec: block dim == full array dim), so no padding / slicing is
    needed.  Otherwise use an `align`-multiple tile and pad up to a multiple.
    """
    if dim <= block:
        return dim, dim
    t = max(align, (block // align) * align)
    return t, _round_up(dim, t)


def _pad2d(a, rows, cols):
    pr, pc = rows - a.shape[0], cols - a.shape[1]
    if pr == 0 and pc == 0:
        return a
    return jnp.pad(a, ((0, pr), (0, pc)))


@functools.partial(jax.jit,
                   static_argnames=("task", "cpca_delta", "block_m", "block_n"))
def gpsp_forward(x, y, W, *, task="cca", cpca_delta=0.1,
                 block_m=512, block_n=512):
    """Forward pass of GPSPLayer.

    x: (B, x_dim); y: (B, y_dim) (required for 'cca'/'sfa', ignored for 'cpca');
    W: (latent_dim, x_dim + y_dim) for 'cca', (latent_dim, x_dim) otherwise.
    Returns eta @ W.T with shape (B, latent_dim).
    """
    if task not in ("cca", "sfa", "cpca"):
        raise ValueError(f"Task must be one of ['cca', 'sfa', 'cpca'], got {task}")

    B, x_dim = x.shape
    L = W.shape[0]

    tm, B_pad = _tile(B, block_m, 8)      # sublane-aligned batch tiles
    tn, L_pad = _tile(L, block_n, 128)    # lane-dense latent tiles
    grid = (B_pad // tm, L_pad // tn)

    compiler_params = pltpu.CompilerParams(
        dimension_semantics=("parallel", "parallel"))
    out_shape = jax.ShapeDtypeStruct((B_pad, L_pad), x.dtype)
    out_spec = pl.BlockSpec((tm, tn), lambda i, j: (i, j))

    if task == "cca":
        if y is None:
            raise ValueError("y must be provided for CCA")
        y_dim = y.shape[1]
        assert W.shape == (L, x_dim + y_dim), (
            f"cca expects W of shape {(L, x_dim + y_dim)}, got {W.shape}")
        F = x_dim + y_dim
        # TODO(synk): a production layer would store W pre-split (Wx, Wy) at
        # init; under jit these slices fuse and are cheap anyway.
        Wx = _pad2d(W[:, :x_dim], L_pad, x_dim)
        Wy = _pad2d(W[:, x_dim:], L_pad, y_dim)
        xp = _pad2d(x, B_pad, x_dim)
        yp = _pad2d(y, B_pad, y_dim)

        cost = pl.CostEstimate(
            flops=2 * B_pad * F * L_pad,
            transcendentals=0,
            bytes_accessed=4 * (B_pad * F + L_pad * F + B_pad * L_pad))

        out = pl.pallas_call(
            _cca_kernel,
            out_shape=out_shape,
            grid_spec=pltpu.PrefetchScalarGridSpec(
                num_scalar_prefetch=0,
                grid=grid,
                in_specs=[
                    pl.BlockSpec((tm, x_dim), lambda i, j: (i, 0)),
                    pl.BlockSpec((tm, y_dim), lambda i, j: (i, 0)),
                    pl.BlockSpec((tn, x_dim), lambda i, j: (j, 0)),
                    pl.BlockSpec((tn, y_dim), lambda i, j: (j, 0)),
                ],
                out_specs=out_spec,
            ),
            compiler_params=compiler_params,
            cost_estimate=cost,
        )(xp, yp, Wx, Wy)

    elif task == "sfa":
        if y is None:
            raise ValueError("y must be provided for SFA")
        assert y.shape == x.shape, (
            f"sfa requires x and y of equal shape, got {x.shape} vs {y.shape}")
        assert W.shape == (L, x_dim), (
            f"sfa expects W of shape {(L, x_dim)}, got {W.shape}")
        Wp = _pad2d(W, L_pad, x_dim)
        xp = _pad2d(x, B_pad, x_dim)
        yp = _pad2d(y, B_pad, x_dim)

        cost = pl.CostEstimate(
            flops=2 * B_pad * x_dim * L_pad + B_pad * x_dim,
            transcendentals=0,
            bytes_accessed=4 * (2 * B_pad * x_dim + L_pad * x_dim
                                + B_pad * L_pad))

        out = pl.pallas_call(
            _sfa_kernel,
            out_shape=out_shape,
            grid_spec=pltpu.PrefetchScalarGridSpec(
                num_scalar_prefetch=0,
                grid=grid,
                in_specs=[
                    pl.BlockSpec((tm, x_dim), lambda i, j: (i, 0)),
                    pl.BlockSpec((tm, x_dim), lambda i, j: (i, 0)),
                    pl.BlockSpec((tn, x_dim), lambda i, j: (j, 0)),
                ],
                out_specs=out_spec,
            ),
            compiler_params=compiler_params,
            cost_estimate=cost,
        )(xp, yp, Wp)

    else:  # cpca
        assert W.shape == (L, x_dim), (
            f"cpca expects W of shape {(L, x_dim)}, got {W.shape}")
        Wp = _pad2d(W, L_pad, x_dim)
        xp = _pad2d(x, B_pad, x_dim)

        cost = pl.CostEstimate(
            flops=2 * B_pad * x_dim * L_pad + B_pad * x_dim,
            transcendentals=0,
            bytes_accessed=4 * (B_pad * x_dim + L_pad * x_dim
                                + B_pad * L_pad))

        out = pl.pallas_call(
            functools.partial(_cpca_kernel, delta=float(cpca_delta)),
            out_shape=out_shape,
            grid_spec=pltpu.PrefetchScalarGridSpec(
                num_scalar_prefetch=0,
                grid=grid,
                in_specs=[
                    pl.BlockSpec((tm, x_dim), lambda i, j: (i, 0)),
                    pl.BlockSpec((tn, x_dim), lambda i, j: (j, 0)),
                ],
                out_specs=out_spec,
            ),
            compiler_params=compiler_params,
            cost_estimate=cost,
        )(xp, Wp)

    if B_pad == B and L_pad == L:
        return out
    return out[:B, :L]


def reference_forward(x, y, W, *, task="cca", cpca_delta=0.1):
    if task == "cca":
        eta = jnp.concatenate((x, y), axis=-1)
    elif task == "sfa":
        eta = x + y
    else:
        eta = x * cpca_delta
    return eta @ W.T


if __name__ == "__main__":
    # Small shapes consistent with the module.
    batch, x_dim, y_dim, latent_dim = 8, 16, 16, 32

    key = jax.random.PRNGKey(0)
    kx, ky, kW, kWs, kM = jax.random.split(key, 5)

    x = jax.random.normal(kx, (batch, x_dim), dtype=jnp.float32)
    y = jax.random.normal(ky, (batch, y_dim), dtype=jnp.float32)

    # Parameter init mirroring __init__:
    #   W ~ randn(latent_dim, x_dim + y_dim);  M = |randn(latent_dim, latent_dim)|
    W_cca = jax.random.normal(kW, (latent_dim, x_dim + y_dim), dtype=jnp.float32)
    W_x = jax.random.normal(kWs, (latent_dim, x_dim), dtype=jnp.float32)
    M = jnp.abs(jax.random.normal(kM, (latent_dim, latent_dim), dtype=jnp.float32))
    del M  # M is not used in the forward pass (only in train_step)

    # cca (default task)
    out = jax.block_until_ready(gpsp_forward(x, y, W_cca, task="cca"))
    ref = reference_forward(x, y, W_cca, task="cca")
    assert out.shape == (batch, latent_dim), out.shape
    assert jnp.allclose(out, ref, atol=1e-4, rtol=1e-4), "cca mismatch vs reference"

    # sfa
    out_sfa = jax.block_until_ready(gpsp_forward(x, y, W_x, task="sfa"))
    ref_sfa = reference_forward(x, y, W_x, task="sfa")
    assert jnp.allclose(out_sfa, ref_sfa, atol=1e-4, rtol=1e-4), "sfa mismatch"

    # cpca
    out_cpca = jax.block_until_ready(
        gpsp_forward(x, None, W_x, task="cpca", cpca_delta=0.1))
    ref_cpca = reference_forward(x, None, W_x, task="cpca", cpca_delta=0.1)
    assert jnp.allclose(out_cpca, ref_cpca, atol=1e-4, rtol=1e-4), "cpca mismatch"

    print("KERNEL_OK")
</pallas_src>

<mosaic_0001>
module attributes {stable_mosaic.version = 11 : i64} {
  func.func @_cca_kernel(%arg0: i32, %arg1: i32, %arg2: memref<8x16xf32, #tpu.memory_space<vmem>>, %arg3: memref<8x16xf32, #tpu.memory_space<vmem>>, %arg4: memref<32x16xf32, #tpu.memory_space<vmem>>, %arg5: memref<32x16xf32, #tpu.memory_space<vmem>>, %arg6: memref<8x32xf32, #tpu.memory_space<vmem>>) attributes {dimension_semantics = [#tpu.dimension_semantics<parallel>, #tpu.dimension_semantics<parallel>], iteration_bounds = array<i64: 1, 1>, scalar_prefetch = 0 : i64, scratch_operands = 0 : i64, tpu.core_type = #tpu.core_type<tc>, window_params = [{transform_indices = @transform_0, window_bounds = array<i64: 8, 16>}, {transform_indices = @transform_1, window_bounds = array<i64: 8, 16>}, {transform_indices = @transform_2, window_bounds = array<i64: 32, 16>}, {transform_indices = @transform_3, window_bounds = array<i64: 32, 16>}, {transform_indices = @transform_4, window_bounds = array<i64: 8, 32>}]} {
    %c0 = arith.constant 0 : index
    %c0_0 = arith.constant 0 : index
    %0 = vector.load %arg2[%c0, %c0_0] : memref<8x16xf32, #tpu.memory_space<vmem>>, vector<8x16xf32>
    %c0_1 = arith.constant 0 : index
    %c0_2 = arith.constant 0 : index
    %1 = vector.load %arg4[%c0_1, %c0_2] : memref<32x16xf32, #tpu.memory_space<vmem>>, vector<32x16xf32>
    %cst = arith.constant dense<0.000000e+00> : vector<8x32xf32>
    %2 = tpu.matmul %0, %1, %cst {dimension_numbers = #tpu.dot_dimension_numbers<[1], [1], [0], [0], [0, 0, 1, 0], [], []>} : vector<8x16xf32>, vector<32x16xf32>, vector<8x32xf32> -> vector<8x32xf32>
    %c0_3 = arith.constant 0 : index
    %c0_4 = arith.constant 0 : index
    %3 = vector.load %arg3[%c0_3, %c0_4] : memref<8x16xf32, #tpu.memory_space<vmem>>, vector<8x16xf32>
    %c0_5 = arith.constant 0 : index
    %c0_6 = arith.constant 0 : index
    %4 = vector.load %arg5[%c0_5, %c0_6] : memref<32x16xf32, #tpu.memory_space<vmem>>, vector<32x16xf32>
    %cst_7 = arith.constant dense<0.000000e+00> : vector<8x32xf32>
    %5 = tpu.matmul %3, %4, %cst_7 {dimension_numbers = #tpu.dot_dimension_numbers<[1], [1], [0], [0], [0, 0, 1, 0], [], []>} : vector<8x16xf32>, vector<32x16xf32>, vector<8x32xf32> -> vector<8x32xf32>
    %6 = arith.addf %2, %5 : vector<8x32xf32>
    %c0_8 = arith.constant 0 : index
    %c0_9 = arith.constant 0 : index
    %7 = vector.load %arg6[%c0_8, %c0_9] : memref<8x32xf32, #tpu.memory_space<vmem>>, vector<8x32xf32>
    tpu.vector_store %arg6[%c0_8, %c0_9], %6 {strides = array<i32>} : memref<8x32xf32, #tpu.memory_space<vmem>>, vector<8x32xf32>,
    return
  }
  func.func @transform_0(%arg0: i32, %arg1: i32) -> (i32, i32) {
    %c0_i32 = arith.constant 0 : i32
    %c0_i32_0 = arith.constant 0 : i32
    return %arg0, %c0_i32 : i32, i32
  }
  func.func @transform_1(%arg0: i32, %arg1: i32) -> (i32, i32) {
    %c0_i32 = arith.constant 0 : i32
    %c0_i32_0 = arith.constant 0 : i32
    return %arg0, %c0_i32 : i32, i32
  }
  func.func @transform_2(%arg0: i32, %arg1: i32) -> (i32, i32) {
    %c0_i32 = arith.constant 0 : i32
    %c0_i32_0 = arith.constant 0 : i32
    return %arg1, %c0_i32 : i32, i32
  }
  func.func @transform_3(%arg0: i32, %arg1: i32) -> (i32, i32) {
    %c0_i32 = arith.constant 0 : i32
    %c0_i32_0 = arith.constant 0 : i32
    return %arg1, %c0_i32 : i32, i32
  }
  func.func @transform_4(%arg0: i32, %arg1: i32) -> (i32, i32) {
    %c0_i32 = arith.constant 0 : i32
    return %arg0, %arg1 : i32, i32
  }
}

</mosaic_0001>

<bundles_post_ra>
// kernel: gpsp_forward.1
= control target key start
LH: loop header
LB: loop body
LE: loop exit
PB: predicated region body
PF: predicated region fallthrough
CT: control target
= control target key end

     0   :  { %vm28_vm0 = vcmask 130048   ;;  %v302_v3 = vmov 0.0|0.0   ;;  %vm303_vm2 = vmmov 0   ;;  %v304_v8 = vmov 0.0   ;;  %s389_s0 = inlined_call_operand.vmem [shape: f32[8,16], index: 0, kind: input, shape index: {}]   ;;  %s390_s1 = inlined_call_operand.vmem [shape: f32[8,16], index: 1, kind: input, shape index: {}]   ;;  %s391_s2 = inlined_call_operand.vmem [shape: f32[32,16], index: 2, kind: input, shape index: {}]   ;;  %s392_s3 = inlined_call_operand.vmem [shape: f32[32,16], index: 3, kind: input, shape index: {}]   ;;  %s393_s4 = inlined_call_operand.hbm [shape: f32[8,32], index: 4, kind: output, shape index: {}]  }
   0x1   :  { %v24_v0 = vld [vmem:[%s392_s3] sm:$0xff]  ;;  %v25_v1 = vld [vmem:[%s392_s3 + $0x8] sm:$0xff]  ;;  %257 = vmatprep.subr.bf16.mxu1 %v302_v3  ;;  %265 = vmatprep.subr.bf16.mxu0 %v302_v3  ;;  %vm342_vm1 = vmpackc.low %vm28_vm0, %vm28_vm0 }
   0x2   :  { %v19_v2 = vld [vmem:[%s391_s2] sm:$0xff]  ;;  %v258_v4 = vpack.c.bf16 %v25_v1, %v24_v0  ;;  %v20_v6 = vld [vmem:[%s391_s2 + $0x8] sm:$0xff]  ;;  %243 = vmatprep.mubr.msk.f32.mxu1 %vm303_vm2, %v304_v8  ;;  %254 = vmatprep.mubr.msk.f32.mxu0 %vm303_vm2, %v304_v8 }
   0x3   :  { %v266_v7 = vpack.c.bf16 %v20_v6, %v19_v2 }
   0x4   :  { %260 = vmatpush3.bf16.xpose.msk.msra.mxu1 %vm342_vm1, %v258_v4 }
   0x5   :  { %9 = vsyncpa [#allocation3], 0  ;;  %268 = vmatpush3.bf16.xpose.msk.msra.mxu0 %vm342_vm1, %v266_v7  ;;  %261 = vmatprep.subr.bf16.mxu1 %v302_v3  ;;  %v26_v9 = vld [vmem:[%s392_s3 + $0x10] sm:$0xff]  ;;  %v27_v10 = vld [vmem:[%s392_s3 + $0x18] sm:$0xff]  ;;  %vm199_vm3 = vcmask 261120  }
   0x6   :  { %269 = vmatprep.subr.bf16.mxu0 %v302_v3  ;;  %v21_v11 = vld [vmem:[%s391_s2 + $0x10] sm:$0xff]  ;;  %v22_v12 = vld [vmem:[%s391_s2 + $0x18] sm:$0xff]  ;;  %v262_v13 = vpack.c.bf16 %v27_v10, %v26_v9  ;;  %v23_v15 = vld [vmem:[%s390_s1] sm:$0xff]  ;;  %s305_s2 = smov [#allocation2]  }
   0x7   :  { %v270_v14 = vpack.c.bf16 %v22_v12, %v21_v11  ;;  %v18_v16 = vld [vmem:[%s389_s0] sm:$0xff]  ;;  %s207_s8 = sshll.u32 %s305_s2, 4  ;;  %s208_s8 = int_to_ptr.vmem [resolvable:$true] %s207_s8 }
   0x8   :  { %s278_s9 = scalar_lea.vmem %s208_s8, 128  ;;  %p283_p1 = scmp.lt.s32.totalorder %s208_s8, %s208_s8 }
   0x9   :  { %p279_p0 = scmp.ne.s32.totalorder %s208_s8, %s278_s9  ;;  %p284_p2 = scmp.lt.s32.totalorder %s278_s9, %s278_s9 }
   0xb   :  { %p285_p3 = por %p284_p2, %p283_p1 }
   0xc   :  { %264 = vmatpush3.bf16.xpose.msk.msra.mxu1 %vm342_vm1, %v262_v13 }
   0xd   :  { %272 = vmatpush3.bf16.xpose.msk.msra.mxu0 %vm342_vm1, %v270_v14  ;;  %p286_p4 = pnand %p285_p3, %p279_p0 }
  0x13   :  { %244 = vmatmul.mubr.msk.f32.vlgmr.msra.gmra.mrb[0].mxu1 %vm28_vm0, %v23_v15 }
  0x14   :  { %255 = vmatmul.mubr.msk.f32.vlgmr.msra.gmra.mrb[0].mxu0 %vm28_vm0, %v18_v16 }
  0xe6   :  { %v110_v17 = vpop.f32.mrb[0].mxu1 }
  0xe7   :  { %v195_v18 = vpop.f32.mrb[0].mxu0  ;;  %v245_v19 = vpop.f32.mrb[1].mxu1 }
  0xe8   :  { %v196_v20 = vadd.f32 %v195_v18, %v110_v17  ;;  %v256_v21 = vpop.f32.mrb[1].mxu0 }
  0xea   :  { %200 = vst.msk [vmem:[#allocation2] sm:$0xff] %vm199_vm3, %v196_v20 }
  0xeb   :  { %289 = shalt.err (!%p286_p4)
}
  0xec   :  { %s290_s10 = scalar_lea.hbm %s393_s4, 128 }
  0xed   :  { %p291_p5 = scmp.ne.s32.totalorder %s393_s4, %s290_s10  ;;  %p294_p6 = scmp.lt.u32.totalorder %s290_s10, %s393_s4 }
  0xef   :  { %p296_p7 = pnand %p294_p6, %p291_p5 }
  0xf1   :  { %299 = shalt.err (!%p296_p7)
}
  0xf2   :  { %210 = dma.vmem_to_hbm [thread:$0]  %s208_s8, 128, %s393_s4, [#allocation3]  }
  0xf3   :  { %300 = dma.done.wait [#allocation3], 128  }
  0xf4   :  { %301 = vsyncadd [#allocation3], 4294967168 }
  0xf5   :  { %214 = vsyncpa [#allocation3], 1 }

</bundles_post_ra>
